<compile_context>
chip_gen: v5e
topology: v5e:2x2
jax: 0.10.0
libtpu: 0.0.40
codegen_flags: <defaults>
</compile_context>

<pallas_src>
import jax
import jax.numpy as jnp
from jax import lax
from jax.experimental import pallas as pl
from jax.experimental.pallas import tpu as pltpu


AUGMENT_DIM = 6
IN_STATE = 2 + AUGMENT_DIM         # 8   (state width; t is folded into bias)
HIDDEN = 64
OUT_DIM = 2 + AUGMENT_DIM          # 8


def _round_up(x, m):
    return (x + m - 1) // m * m


def _resolve_use_bf16(use_bf16):
    """bf16 hidden-layer math only where the hardware supports it."""
    if use_bf16 is not None:
        return bool(use_bf16)
    try:
        dev = jax.devices()[0]
    except Exception:  # pragma: no cover
        return False
    if dev.platform != "tpu":
        return False                       # CPU / interpret: f32 only
    kind = dev.device_kind.lower()
    # bf16 VPU/EUP exists on v6e/v7x; keep f32 elementwise math on v5e.
    return any(tag in kind for tag in ("v6", "v7", "7x"))


def _mlp_kernel(x_ref,
                w1_ref, b1_ref,
                w2_ref, b2_ref,
                w3_ref, b3_ref,
                w4_ref, b4_ref,
                o_ref):
    """4-layer MLP; hidden activations are feature-major (features, batch_tile)."""
    act = w2_ref.dtype                     # hidden-layer matmul/activation dtype

    # Layer 1: full f32 (K=8, negligible MXU work; preserves raw-state precision).
    # x_ref is batch-major (tb, 8); contract feature dims -> feature-major (64, tb).
    h = lax.dot_general(w1_ref[...], x_ref[...],
                        dimension_numbers=(((1,), (1,)), ((), ())),
                        preferred_element_type=jnp.float32) + b1_ref[...]
    h = jnp.tanh(h.astype(act))                                   # (64, tb)

    # Hidden layers: f32 MXU accumulate, then bias+tanh in `act` dtype
    # (bf16 on v6e/v7x -> 2x EUP tanh throughput, half the activation traffic).
    h = jnp.tanh(
        jnp.dot(w2_ref[...], h, preferred_element_type=jnp.float32).astype(act)
        + b2_ref[...])                                            # (64, tb)
    h = jnp.tanh(
        jnp.dot(w3_ref[...], h, preferred_element_type=jnp.float32).astype(act)
        + b3_ref[...])                                            # (64, tb)

    # Output layer: f32 accumulate + f32 bias, lane-dense (8, tb) store.
    o_ref[...] = (
        jnp.dot(w4_ref[...], h, preferred_element_type=jnp.float32)
        + b4_ref[...]).astype(o_ref.dtype)


def augmented_lamb_oseen_ode(t, state, params, *, tb=8192, use_bf16=None):
    """Forward pass matching AugmentedLambOseenODE.forward.

    t      : scalar (python or JAX)
    state  : (B, 2 + augment_dim) float32
    params : (w1, b1, w2, b2, w3, b3, w4, b4); wi: (in, out), bi: (1, out)
             (PyTorch-style weights, stored transposed as (in, out))
    returns: (B, 2 + augment_dim) in state.dtype
    """
    w1, b1, w2, b2, w3, b3, w4, b4 = params
    B = state.shape[0]
    use_bf16 = _resolve_use_bf16(use_bf16)
    act_dtype = jnp.bfloat16 if use_bf16 else jnp.float32

    # ---- Fold t into layer 1 (kills the [xy, t, aug] concat) ---------------
    # input_vec @ w1 + b1 == state @ [w1[:2]; w1[3:]] + (b1 + t * w1[2:3, :])
    w1_state = jnp.concatenate([w1[:2], w1[3:]], axis=0)        # (8, 64)
    b1_eff = b1 + t * w1[2:3, :]                                # (1, 64) f32

    # ---- Feature-major weights (out, in) / biases (out, 1) -----------------
    w1_fm = w1_state.T.astype(jnp.float32)                      # (64, 8)  f32
    b1_fm = b1_eff.T.astype(jnp.float32)                        # (64, 1)  f32
    w2_fm = w2.T.astype(act_dtype)                              # (64, 64)
    b2_fm = b2.T.astype(act_dtype)                              # (64, 1)
    w3_fm = w3.T.astype(act_dtype)                              # (64, 64)
    b3_fm = b3.T.astype(act_dtype)                              # (64, 1)
    w4_fm = w4.T.astype(act_dtype)                              # (8, 64)
    b4_fm = b4.T.astype(jnp.float32)                            # (8, 1)   f32

    # ---- Batch tiling: batch-major input, batch padded to the tile ---------
    Bp128 = _round_up(B, 128)
    tb = _round_up(max(128, min(int(tb), Bp128)), 128)
    # v7x megacore: keep >= 2 grid steps whenever the batch is big enough.
    if Bp128 >= 256 and Bp128 // tb < 2:
        tb = _round_up(-(-Bp128 // 2), 128)
    Bp = _round_up(B, tb)

    x = state.astype(jnp.float32)                               # keep layer-1 f32
    if Bp != B:
        x = jnp.pad(x, ((0, Bp - B), (0, 0)))                   # (Bp, 8)

    grid = (Bp // tb,)

    def resident(shape):
        # Constant block index -> array stays resident in VMEM across the grid.
        return pl.BlockSpec(shape, lambda i: (0, 0))

    in_specs = [
        pl.BlockSpec((tb, IN_STATE), lambda i: (i, 0)),         # input tile (batch-major)
        resident((HIDDEN, IN_STATE)), resident((HIDDEN, 1)),    # w1, b1
        resident((HIDDEN, HIDDEN)),   resident((HIDDEN, 1)),    # w2, b2
        resident((HIDDEN, HIDDEN)),   resident((HIDDEN, 1)),    # w3, b3
        resident((OUT_DIM, HIDDEN)),  resident((OUT_DIM, 1)),   # w4, b4
    ]
    out_spec = pl.BlockSpec((OUT_DIM, tb), lambda i: (0, i))    # lane-dense output slab

    # Explicit VMEM budget from the tile footprint, capped at 48 MiB so there
    # is headroom inside v7x's 64 MiB VMEM (no-op on 128 MiB v5e/v6e).
    act_size = jnp.dtype(act_dtype).itemsize
    tile_bytes = (2 * tb * IN_STATE * 4            # double-buffered input (f32)
                  + 2 * OUT_DIM * tb * 4           # double-buffered output (f32)
                  + 3 * HIDDEN * tb * 4            # pre-tanh f32 dot outputs
                  + 3 * HIDDEN * tb * act_size     # post-tanh activation copies
                  + OUT_DIM * tb * 4               # final pre-store f32
                  + 256 * 1024)                    # weights + biases + slack
    vmem_limit = int(min(max(2 * tile_bytes, 16 << 20), 48 << 20))

    out_fm = pl.pallas_call(
        _mlp_kernel,
        out_shape=jax.ShapeDtypeStruct((OUT_DIM, Bp), jnp.float32),
        grid=grid,
        in_specs=in_specs,
        out_specs=out_spec,
        compiler_params=pltpu.CompilerParams(
            dimension_semantics=("parallel",),
            vmem_limit_bytes=vmem_limit),
    )(x, w1_fm, b1_fm, w2_fm, b2_fm, w3_fm, b3_fm, w4_fm, b4_fm)

    return out_fm[:, :B].T.astype(state.dtype)                  # (B, 8)


def init_params(key):
    """Deterministic PyTorch-style (uniform +-1/sqrt(fan_in)) init."""
    in_dim = 3 + AUGMENT_DIM
    dims = [(in_dim, HIDDEN), (HIDDEN, HIDDEN), (HIDDEN, HIDDEN), (HIDDEN, OUT_DIM)]
    params = []
    for fan_in, fan_out in dims:
        key, kw, kb = jax.random.split(key, 3)
        bound = 1.0 / jnp.sqrt(fan_in)
        w = jax.random.uniform(kw, (fan_in, fan_out), jnp.float32, -bound, bound)
        b = jax.random.uniform(kb, (1, fan_out), jnp.float32, -bound, bound)
        params += [w, b]
    return tuple(params)


def _reference(t, state, params):
    """Pure-JAX reference for correctness checking."""
    w1, b1, w2, b2, w3, b3, w4, b4 = params
    B = state.shape[0]
    x = jnp.concatenate(
        [state[:, :2], jnp.full((B, 1), t, state.dtype), state[:, 2:]], axis=1)
    h = jnp.tanh(x @ w1 + b1)
    h = jnp.tanh(h @ w2 + b2)
    h = jnp.tanh(h @ w3 + b3)
    return h @ w4 + b4


if __name__ == "__main__":
    key = jax.random.PRNGKey(0)
    kp, ks, ks2 = jax.random.split(key, 3)
    params = init_params(kp)
    t = 0.5

    fwd = jax.jit(augmented_lamb_oseen_ode, static_argnames=("tb", "use_bf16"))

    # --- small batch (single 128-lane tile), forced f32: bit-tight parity ---
    B = 8
    state = jax.random.normal(ks, (B, 2 + AUGMENT_DIM), jnp.float32)
    ref = _reference(t, state, params)
    out_f32 = jax.block_until_ready(fwd(t, state, params, use_bf16=False))
    assert out_f32.shape == (B, 2 + AUGMENT_DIM)
    assert jnp.allclose(out_f32, ref, atol=1e-5, rtol=1e-5), (
        f"f32 max abs err {jnp.max(jnp.abs(out_f32 - ref))}")

    # --- auto dtype (bf16 hidden layers only on v6e/v7x hardware) -----------
    out_auto = jax.block_until_ready(fwd(t, state, params))
    assert out_auto.shape == (B, 2 + AUGMENT_DIM)
    assert jnp.allclose(out_auto, ref, atol=5e-2, rtol=5e-2), (
        f"auto max abs err {jnp.max(jnp.abs(out_auto - ref))}")

    # --- larger batch: exercises padding + the >=2-step grid path, f32 ------
    B2 = 300
    state2 = jax.random.normal(ks2, (B2, 2 + AUGMENT_DIM), jnp.float32)
    ref2 = _reference(t, state2, params)
    out2 = jax.block_until_ready(fwd(t, state2, params, use_bf16=False))
    assert out2.shape == (B2, 2 + AUGMENT_DIM)
    assert jnp.allclose(out2, ref2, atol=1e-5, rtol=1e-5), (
        f"f32 (B=300) max abs err {jnp.max(jnp.abs(out2 - ref2))}")

    print("KERNEL_OK")
</pallas_src>

<mosaic_0001>
module attributes {stable_mosaic.version = 11 : i64} {
  func.func @_mlp_kernel(%arg0: i32, %arg1: memref<128x8xf32, #tpu.memory_space<vmem>>, %arg2: memref<64x8xf32, #tpu.memory_space<vmem>>, %arg3: memref<64x1xf32, #tpu.memory_space<vmem>>, %arg4: memref<64x64xf32, #tpu.memory_space<vmem>>, %arg5: memref<64x1xf32, #tpu.memory_space<vmem>>, %arg6: memref<64x64xf32, #tpu.memory_space<vmem>>, %arg7: memref<64x1xf32, #tpu.memory_space<vmem>>, %arg8: memref<8x64xf32, #tpu.memory_space<vmem>>, %arg9: memref<8x1xf32, #tpu.memory_space<vmem>>, %arg10: memref<8x128xf32, #tpu.memory_space<vmem>>) attributes {dimension_semantics = [#tpu.dimension_semantics<parallel>], iteration_bounds = array<i64: 1>, scalar_prefetch = 0 : i64, scratch_operands = 0 : i64, tpu.core_type = #tpu.core_type<tc>, window_params = [{transform_indices = @transform_0, window_bounds = array<i64: 128, 8>}, {pipeline_mode = #tpu.pipeline_mode<synchronous>, transform_indices = @transform_1, window_bounds = array<i64: 64, 8>}, {pipeline_mode = #tpu.pipeline_mode<synchronous>, transform_indices = @transform_2, window_bounds = array<i64: 64, 1>}, {pipeline_mode = #tpu.pipeline_mode<synchronous>, transform_indices = @transform_3, window_bounds = array<i64: 64, 64>}, {pipeline_mode = #tpu.pipeline_mode<synchronous>, transform_indices = @transform_4, window_bounds = array<i64: 64, 1>}, {pipeline_mode = #tpu.pipeline_mode<synchronous>, transform_indices = @transform_5, window_bounds = array<i64: 64, 64>}, {pipeline_mode = #tpu.pipeline_mode<synchronous>, transform_indices = @transform_6, window_bounds = array<i64: 64, 1>}, {pipeline_mode = #tpu.pipeline_mode<synchronous>, transform_indices = @transform_7, window_bounds = array<i64: 8, 64>}, {pipeline_mode = #tpu.pipeline_mode<synchronous>, transform_indices = @transform_8, window_bounds = array<i64: 8, 1>}, {transform_indices = @transform_9, window_bounds = array<i64: 8, 128>}]} {
    %c0 = arith.constant 0 : index
    %c0_0 = arith.constant 0 : index
    %0 = vector.load %arg2[%c0, %c0_0] : memref<64x8xf32, #tpu.memory_space<vmem>>, vector<64x8xf32>
    %c0_1 = arith.constant 0 : index
    %c0_2 = arith.constant 0 : index
    %1 = vector.load %arg1[%c0_1, %c0_2] : memref<128x8xf32, #tpu.memory_space<vmem>>, vector<128x8xf32>
    %cst = arith.constant dense<0.000000e+00> : vector<64x128xf32>
    %2 = tpu.matmul %0, %1, %cst {dimension_numbers = #tpu.dot_dimension_numbers<[1], [1], [0], [0], [0, 0, 1, 0], [], []>} : vector<64x8xf32>, vector<128x8xf32>, vector<64x128xf32> -> vector<64x128xf32>
    %c0_3 = arith.constant 0 : index
    %c0_4 = arith.constant 0 : index
    %3 = vector.load %arg3[%c0_3, %c0_4] : memref<64x1xf32, #tpu.memory_space<vmem>>, vector<64x1xf32>
    %4 = vector.broadcast %3 : vector<64x1xf32> to vector<64x128xf32>
    %5 = arith.addf %2, %4 : vector<64x128xf32>
    %6 = math.tanh %5 : vector<64x128xf32>
    %c0_5 = arith.constant 0 : index
    %c0_6 = arith.constant 0 : index
    %7 = vector.load %arg4[%c0_5, %c0_6] : memref<64x64xf32, #tpu.memory_space<vmem>>, vector<64x64xf32>
    %cst_7 = arith.constant dense<0.000000e+00> : vector<64x128xf32>
    %8 = tpu.matmul %7, %6, %cst_7 {dimension_numbers = #tpu.dot_dimension_numbers<[1], [0], [0], [1], [0, 0, 1, 1], [], []>} : vector<64x64xf32>, vector<64x128xf32>, vector<64x128xf32> -> vector<64x128xf32>
    %c0_8 = arith.constant 0 : index
    %c0_9 = arith.constant 0 : index
    %9 = vector.load %arg5[%c0_8, %c0_9] : memref<64x1xf32, #tpu.memory_space<vmem>>, vector<64x1xf32>
    %10 = vector.broadcast %9 : vector<64x1xf32> to vector<64x128xf32>
    %11 = arith.addf %8, %10 : vector<64x128xf32>
    %12 = math.tanh %11 : vector<64x128xf32>
    %c0_10 = arith.constant 0 : index
    %c0_11 = arith.constant 0 : index
    %13 = vector.load %arg6[%c0_10, %c0_11] : memref<64x64xf32, #tpu.memory_space<vmem>>, vector<64x64xf32>
    %cst_12 = arith.constant dense<0.000000e+00> : vector<64x128xf32>
    %14 = tpu.matmul %13, %12, %cst_12 {dimension_numbers = #tpu.dot_dimension_numbers<[1], [0], [0], [1], [0, 0, 1, 1], [], []>} : vector<64x64xf32>, vector<64x128xf32>, vector<64x128xf32> -> vector<64x128xf32>
    %c0_13 = arith.constant 0 : index
    %c0_14 = arith.constant 0 : index
    %15 = vector.load %arg7[%c0_13, %c0_14] : memref<64x1xf32, #tpu.memory_space<vmem>>, vector<64x1xf32>
    %16 = vector.broadcast %15 : vector<64x1xf32> to vector<64x128xf32>
    %17 = arith.addf %14, %16 : vector<64x128xf32>
    %18 = math.tanh %17 : vector<64x128xf32>
    %c0_15 = arith.constant 0 : index
    %c0_16 = arith.constant 0 : index
    %19 = vector.load %arg8[%c0_15, %c0_16] : memref<8x64xf32, #tpu.memory_space<vmem>>, vector<8x64xf32>
    %cst_17 = arith.constant dense<0.000000e+00> : vector<8x128xf32>
    %20 = tpu.matmul %19, %18, %cst_17 {dimension_numbers = #tpu.dot_dimension_numbers<[1], [0], [0], [1], [0, 0, 1, 1], [], []>} : vector<8x64xf32>, vector<64x128xf32>, vector<8x128xf32> -> vector<8x128xf32>
    %c0_18 = arith.constant 0 : index
    %c0_19 = arith.constant 0 : index
    %21 = vector.load %arg9[%c0_18, %c0_19] : memref<8x1xf32, #tpu.memory_space<vmem>>, vector<8x1xf32>
    %22 = vector.broadcast %21 : vector<8x1xf32> to vector<8x128xf32>
    %23 = arith.addf %20, %22 : vector<8x128xf32>
    %c0_20 = arith.constant 0 : index
    %c0_21 = arith.constant 0 : index
    %24 = vector.load %arg10[%c0_20, %c0_21] : memref<8x128xf32, #tpu.memory_space<vmem>>, vector<8x128xf32>
    tpu.vector_store %arg10[%c0_20, %c0_21], %23 {strides = array<i32>} : memref<8x128xf32, #tpu.memory_space<vmem>>, vector<8x128xf32>,
    return
  }
  func.func @transform_0(%arg0: i32) -> (i32, i32) {
    %c0_i32 = arith.constant 0 : i32
    %c0_i32_0 = arith.constant 0 : i32
    return %arg0, %c0_i32 : i32, i32
  }
  func.func @transform_1(%arg0: i32) -> (i32, i32) {
    %c0_i32 = arith.constant 0 : i32
    %c0_i32_0 = arith.constant 0 : i32
    %c0_i32_1 = arith.constant 0 : i32
    return %c0_i32, %c0_i32_0 : i32, i32
  }
  func.func @transform_2(%arg0: i32) -> (i32, i32) {
    %c0_i32 = arith.constant 0 : i32
    %c0_i32_0 = arith.constant 0 : i32
    %c0_i32_1 = arith.constant 0 : i32
    return %c0_i32, %c0_i32_0 : i32, i32
  }
  func.func @transform_3(%arg0: i32) -> (i32, i32) {
    %c0_i32 = arith.constant 0 : i32
    %c0_i32_0 = arith.constant 0 : i32
    %c0_i32_1 = arith.constant 0 : i32
    return %c0_i32, %c0_i32_0 : i32, i32
  }
  func.func @transform_4(%arg0: i32) -> (i32, i32) {
    %c0_i32 = arith.constant 0 : i32
    %c0_i32_0 = arith.constant 0 : i32
    %c0_i32_1 = arith.constant 0 : i32
    return %c0_i32, %c0_i32_0 : i32, i32
  }
  func.func @transform_5(%arg0: i32) -> (i32, i32) {
    %c0_i32 = arith.constant 0 : i32
    %c0_i32_0 = arith.constant 0 : i32
    %c0_i32_1 = arith.constant 0 : i32
    return %c0_i32, %c0_i32_0 : i32, i32
  }
  func.func @transform_6(%arg0: i32) -> (i32, i32) {
    %c0_i32 = arith.constant 0 : i32
    %c0_i32_0 = arith.constant 0 : i32
    %c0_i32_1 = arith.constant 0 : i32
    return %c0_i32, %c0_i32_0 : i32, i32
  }
  func.func @transform_7(%arg0: i32) -> (i32, i32) {
    %c0_i32 = arith.constant 0 : i32
    %c0_i32_0 = arith.constant 0 : i32
    %c0_i32_1 = arith.constant 0 : i32
    return %c0_i32, %c0_i32_0 : i32, i32
  }
  func.func @transform_8(%arg0: i32) -> (i32, i32) {
    %c0_i32 = arith.constant 0 : i32
    %c0_i32_0 = arith.constant 0 : i32
    %c0_i32_1 = arith.constant 0 : i32
    return %c0_i32, %c0_i32_0 : i32, i32
  }
  func.func @transform_9(%arg0: i32) -> (i32, i32) {
    %c0_i32 = arith.constant 0 : i32
    %c0_i32_0 = arith.constant 0 : i32
    return %c0_i32, %arg0 : i32, i32
  }
}

</mosaic_0001>

<bundles_post_ra>
// kernel: augmented_lamb_oseen_ode.1
= control target key start
LH: loop header
LB: loop body
LE: loop exit
PB: predicated region body
PF: predicated region fallthrough
CT: control target
= control target key end

     0   :  { %vm104_vm0 = vcmask 64512   ;;  %v629_v2 = vmov 0   ;;  %vm282_vm1 = vcmask 523264   ;;  %s938_s0 = inlined_call_operand.vmem [shape: f32[128,8], index: 0, kind: input, shape index: {}]   ;;  %s939_s2 = inlined_call_operand.vmem [shape: f32[64,1], index: 2, kind: input, shape index: {}]   ;;  %s940_s4 = inlined_call_operand.vmem [shape: f32[64,1], index: 4, kind: input, shape index: {}]   ;;  %s941_s6 = inlined_call_operand.vmem [shape: f32[64,1], index: 6, kind: input, shape index: {}]   ;;  %s942_s1 = inlined_call_operand.vmem [shape: f32[64,8], index: 1, kind: input, shape index: {}]   ;;  %s943_s8 = inlined_call_operand.vmem [shape: f32[8,1], index: 8, kind: input, shape index: {}]   ;;  %s944_s3 = inlined_call_operand.vmem [shape: f32[64,64], index: 3, kind: input, shape index: {}]   ;;  %s945_s5 = inlined_call_operand.vmem [shape: f32[64,64], index: 5, kind: input, shape index: {}]   ;;  %s946_s7 = inlined_call_operand.vmem [shape: f32[8,64], index: 7, kind: input, shape index: {}]   ;;  %s947_s9 = inlined_call_operand.vmem [shape: f32[8,128], index: 9, kind: output, shape index: {}]  }
   0x1   :  { %v55_v0 = vld [vmem:[%s938_s0 + $0x78] sm:$0xff]  ;;  %v54_v1 = vld [vmem:[%s938_s0 + $0x70] sm:$0xff]  ;;  %578 = vset.pattern.permute.xlu0 %v629_v2  ;;  %579 = vset.pattern.permute.xlu1 %v629_v2  ;;  %v53_v4 = vld [vmem:[%s938_s0 + $0x68] sm:$0xff] }
   0x2   :  { %561 = vmatpush.xpose.msk.msra.mxu3 %vm104_vm0, %v55_v0  ;;  %520 = vmatpush.xpose.msk.msra.mxu0 %vm104_vm0, %v55_v0  ;;  %v63_v3 = vld [vmem:[%s939_s2 + $0x38] sm:$0xff]  ;;  %v62_v5 = vld [vmem:[%s939_s2 + $0x30] sm:$0xff]  ;;  %v52_v6 = vld [vmem:[%s938_s0 + $0x60] sm:$0xff] }
   0x3   :  { %580 = vset.pattern.permute.xlu2 %v629_v2  ;;  %101 = vperm.xlu0 %578, %v63_v3   ;;  %v61_v7 = vld [vmem:[%s939_s2 + $0x28] sm:$0xff]  ;;  %v51_v8 = vld [vmem:[%s938_s0 + $0x58] sm:$0xff]  ;;  %v50_v10 = vld [vmem:[%s938_s0 + $0x50] sm:$0xff] }
   0x4   :  { %91 = vperm.xlu1 %579, %v61_v7   ;;  %v57_v9 = vld [vmem:[%s939_s2 + $0x8] sm:$0xff]  ;;  %v60_v11 = vld [vmem:[%s939_s2 + $0x20] sm:$0xff]  ;;  %v240_v13 = vld [vmem:[%s940_s4 + $0x30] sm:$0xff] }
   0x5   :  { %v49_v12 = vld [vmem:[%s938_s0 + $0x48] sm:$0xff]  ;;  %v48_v14 = vld [vmem:[%s938_s0 + $0x40] sm:$0xff]  ;;  %v47_v16 = vld [vmem:[%s938_s0 + $0x38] sm:$0xff] }
   0x6   :  { %562 = vmatpush.xpose.msk.msra.mxu3 %vm104_vm0, %v54_v1  ;;  %521 = vmatpush.xpose.msk.msra.mxu0 %vm104_vm0, %v54_v1  ;;  %v56_v15 = vld [vmem:[%s939_s2] sm:$0xff]  ;;  %v237_v17 = vld [vmem:[%s940_s4 + $0x18] sm:$0xff]  ;;  %v46_v18 = vld [vmem:[%s938_s0 + $0x30] sm:$0xff] }
   0x7   :  { %v239_v19 = vld [vmem:[%s940_s4 + $0x28] sm:$0xff]  ;;  %v59_v21 = vld [vmem:[%s939_s2 + $0x18] sm:$0xff]  ;;  %v234_v22 = vld [vmem:[%s940_s4] sm:$0xff] }
   0x8   :  { %v45_v20 = vld [vmem:[%s938_s0 + $0x28] sm:$0xff]  ;;  %v44_v23 = vld [vmem:[%s938_s0 + $0x20] sm:$0xff]  ;;  %81 = vperm.xlu2 %580, %v59_v21   ;;  %v236_v24 = vld [vmem:[%s940_s4 + $0x10] sm:$0xff] }
   0x9   :  { %v43_v25 = vld [vmem:[%s938_s0 + $0x18] sm:$0xff]  ;;  %v58_v26 = vld [vmem:[%s939_s2 + $0x10] sm:$0xff]  ;;  %v369_v27 = vld [vmem:[%s941_s6 + $0x28] sm:$0xff] }
   0xa   :  { %563 = vmatpush.xpose.msk.msra.mxu3 %vm104_vm0, %v53_v4  ;;  %522 = vmatpush.xpose.msk.msra.mxu0 %vm104_vm0, %v53_v4  ;;  %v42_v28 = vld [vmem:[%s938_s0 + $0x10] sm:$0xff]  ;;  %v371_v29 = vld [vmem:[%s941_s6 + $0x38] sm:$0xff]  ;;  %v41_v30 = vld [vmem:[%s938_s0 + $0x8] sm:$0xff] }
   0xb   :  { %96 = vperm.xlu0 %578, %v62_v5   ;;  %v241_v31 = vld [vmem:[%s940_s4 + $0x38] sm:$0xff]  ;;  %v366_v32 = vld [vmem:[%s941_s6 + $0x10] sm:$0xff]  ;;  %v40_v33 = vld [vmem:[%s938_s0] sm:$0xff] }
   0xc   :  { %86 = vperm.xlu1 %579, %v60_v11   ;;  %v368_v34 = vld [vmem:[%s941_s6 + $0x20] sm:$0xff]  ;;  %v365_v39 = vld [vmem:[%s941_s6 + $0x8] sm:$0xff]  ;;  %v38_v43 = vld [vmem:[%s942_s1 + $0x30] sm:$0xff] }
   0xd   :  { %v36_v35 = vld [vmem:[%s942_s1 + $0x20] sm:$0xff]  ;;  %v37_v40 = vld [vmem:[%s942_s1 + $0x28] sm:$0xff]  ;;  %v34_v44 = vld [vmem:[%s942_s1 + $0x10] sm:$0xff] }
   0xe   :  { %564 = vmatpush.xpose.msk.msra.mxu3 %vm104_vm0, %v52_v6  ;;  %523 = vmatpush.xpose.msk.msra.mxu0 %vm104_vm0, %v52_v6  ;;  %v32_v36 = vld [vmem:[%s942_s1] sm:$0xff]  ;;  %v33_v41 = vld [vmem:[%s942_s1 + $0x8] sm:$0xff]  ;;  %v370_v45 = vld [vmem:[%s941_s6 + $0x30] sm:$0xff] }
   0xf   :  { %v238_v37 = vld [vmem:[%s940_s4 + $0x20] sm:$0xff]  ;;  %v235_v42 = vld [vmem:[%s940_s4 + $0x8] sm:$0xff]  ;;  %v39_v46 = vld [vmem:[%s942_s1 + $0x38] sm:$0xff] }
  0x10   :  { %76 = vperm.xlu2 %580, %v58_v26   ;;  %v486_v38 = vld [vmem:[%s943_s8] sm:$0xff]  ;;  %v35_v47 = vld [vmem:[%s942_s1 + $0x18] sm:$0xff] }
  0x11   :  { %v367_v48 = vld [vmem:[%s941_s6 + $0x18] sm:$0xff]  ;;  %v364_v49 = vld [vmem:[%s941_s6] sm:$0xff] }
  0x12   :  { %565 = vmatpush.xpose.msk.msra.mxu3 %vm104_vm0, %v51_v8  ;;  %524 = vmatpush.xpose.msk.msra.mxu0 %vm104_vm0, %v51_v8  ;;  %v229_v21 = vld [vmem:[%s944_s3 + $0x18] sm:$0xff] }
  0x13   :  { %71 = vperm.xlu0 %578, %v57_v9  }
  0x14   :  { %66 = vperm.xlu1 %579, %v56_v15  }
  0x16   :  { %566 = vmatpush.xpose.msk.msra.mxu3 %vm104_vm0, %v50_v10  ;;  %525 = vmatpush.xpose.msk.msra.mxu0 %vm104_vm0, %v50_v10 }
  0x18   :  { %279 = vperm.xlu2 %580, %v241_v31  }
  0x1a   :  { %567 = vmatpush.xpose.msk.msra.mxu3 %vm104_vm0, %v49_v12  ;;  %526 = vmatpush.xpose.msk.msra.mxu0 %vm104_vm0, %v49_v12 }
  0x1b   :  { %274 = vperm.xlu0 %578, %v240_v13  }
  0x1c   :  { %269 = vperm.xlu1 %579, %v239_v19   ;;  %v227_v19 = vld [vmem:[%s944_s3 + $0x8] sm:$0xff] }
  0x1e   :  { %568 = vmatpush.xpose.msk.msra.mxu3 %vm104_vm0, %v48_v14  ;;  %527 = vmatpush.xpose.msk.msra.mxu0 %vm104_vm0, %v48_v14 }
  0x20   :  { %264 = vperm.xlu2 %580, %v238_v37  }
  0x22   :  { %569 = vmatpush.xpose.msk.msra.mxu3 %vm104_vm0, %v47_v16  ;;  %528 = vmatpush.xpose.msk.msra.mxu0 %vm104_vm0, %v47_v16 }
  0x23   :  { %259 = vperm.xlu0 %578, %v237_v17   ;;  %v226_v17 = vld [vmem:[%s944_s3] sm:$0xff] }
  0x24   :  { %254 = vperm.xlu1 %579, %v236_v24   ;;  %v232_v24 = vld [vmem:[%s944_s3 + $0x30] sm:$0xff] }
  0x26   :  { %570 = vmatpush.xpose.msk.msra.mxu3 %vm104_vm0, %v46_v18  ;;  %529 = vmatpush.xpose.msk.msra.mxu0 %vm104_vm0, %v46_v18 }
  0x28   :  { %249 = vperm.xlu2 %580, %v235_v42  }
  0x2a   :  { %571 = vmatpush.xpose.msk.msra.mxu3 %vm104_vm0, %v45_v20  ;;  %530 = vmatpush.xpose.msk.msra.mxu0 %vm104_vm0, %v45_v20  ;;  %v228_v20 = vld [vmem:[%s944_s3 + $0x10] sm:$0xff] }
  0x2b   :  { %244 = vperm.xlu0 %578, %v234_v22   ;;  %v230_v22 = vld [vmem:[%s944_s3 + $0x20] sm:$0xff] }
  0x2c   :  { %409 = vperm.xlu1 %579, %v371_v29  }
  0x2e   :  { %572 = vmatpush.xpose.msk.msra.mxu3 %vm104_vm0, %v44_v23  ;;  %531 = vmatpush.xpose.msk.msra.mxu0 %vm104_vm0, %v44_v23  ;;  %v231_v23 = vld [vmem:[%s944_s3 + $0x28] sm:$0xff] }
  0x30   :  { %404 = vperm.xlu2 %580, %v370_v45  }
  0x32   :  { %573 = vmatpush.xpose.msk.msra.mxu3 %vm104_vm0, %v43_v25  ;;  %532 = vmatpush.xpose.msk.msra.mxu0 %vm104_vm0, %v43_v25  ;;  %v233_v25 = vld [vmem:[%s944_s3 + $0x38] sm:$0xff] }
  0x33   :  { %399 = vperm.xlu0 %578, %v369_v27  }
  0x34   :  { %394 = vperm.xlu1 %579, %v368_v34  }
  0x36   :  { %574 = vmatpush.xpose.msk.msra.mxu3 %vm104_vm0, %v42_v28  ;;  %533 = vmatpush.xpose.msk.msra.mxu0 %vm104_vm0, %v42_v28 }
  0x38   :  { %389 = vperm.xlu2 %580, %v367_v48  }
  0x3a   :  { %575 = vmatpush.xpose.msk.msra.mxu3 %vm104_vm0, %v41_v30  ;;  %534 = vmatpush.xpose.msk.msra.mxu0 %vm104_vm0, %v41_v30 }
  0x3b   :  { %384 = vperm.xlu0 %578, %v366_v32  }
  0x3c   :  { %379 = vperm.xlu1 %579, %v365_v39  }
  0x3e   :  { %576 = vmatpush.xpose.msk.msra.mxu3 %vm104_vm0, %v40_v33  ;;  %535 = vmatpush.xpose.msk.msra.mxu0 %vm104_vm0, %v40_v33 }
  0x40   :  { %374 = vperm.xlu2 %580, %v364_v49  }
  0x41   :  { %540 = vmatmul.msk.f32.vlgmr.msra.gmra.mxu3 %vm104_vm0, %v36_v35  ;;  %536 = vmatmul.msk.f32.vlgmr.msra.gmra.mxu0 %vm104_vm0, %v32_v36 }
  0x43   :  { %489 = vperm.xlu0 %578, %v486_v38  }
  0x49   :  { %541 = vmatmul.msk.f32.gmra.mxu3 %vm104_vm0, %v37_v40  ;;  %537 = vmatmul.msk.f32.gmra.mxu0 %vm104_vm0, %v33_v41 }
  0x51   :  { %542 = vmatmul.msk.f32.gmra.mxu3 %vm104_vm0, %v38_v43  ;;  %538 = vmatmul.msk.f32.gmra.mxu0 %vm104_vm0, %v34_v44 }
  0x59   :  { %543 = vmatmul.msk.f32.gmra.mxu3 %vm104_vm0, %v39_v46  ;;  %539 = vmatmul.msk.f32.gmra.mxu0 %vm104_vm0, %v35_v47 }
  0x62   :  { %v82_v58 = vpop.permute.xlu2 %81 }
  0x6a   :  { %v77_v4 = vpop.permute.xlu2 %76 }
  0x72   :  { %v280_v32 = vpop.permute.xlu2 %279 }
  0x75   :  { %v102_v54 = vpop.permute.xlu0 %101 }
  0x76   :  { %v92_v55 = vpop.permute.xlu1 %91 }
  0x7a   :  { %v265_v36 = vpop.permute.xlu2 %264 }
  0x7d   :  { %v97_v59 = vpop.permute.xlu0 %96 }
  0x7e   :  { %v87_v63 = vpop.permute.xlu1 %86 }
  0x82   :  { %v250_v47 = vpop.permute.xlu2 %249 }
  0x85   :  { %v72_v7 = vpop.permute.xlu0 %71 }
  0x86   :  { %v67_v10 = vpop.permute.xlu1 %66 }
  0x8d   :  { %v275_v33 = vpop.permute.xlu0 %274 }
  0x8e   :  { %v270_v35 = vpop.permute.xlu1 %269 }
  0x95   :  { %v260_v40 = vpop.permute.xlu0 %259 }
  0x96   :  { %v255_v44 = vpop.permute.xlu1 %254 }
  0xbe   :  { %v194_v50 = vpop.f32.mrf.mxu0 }
  0xbf   :  { %v195_v12 = vadd.f32 %v194_v50, %v67_v10  ;;  %v245_v50 = vpop.permute.xlu0 %244 }
  0xc4   :  { %v206_v51 = vpop.f32.mrf.mxu3 }
  0xc5   :  { %v207_v2 = vadd.f32 %v206_v51, %v87_v63  ;;  %v361_v63 = vld [vmem:[%s945_s5 + $0x28] sm:$0xff] }
  0xc6   :  { %v197_v53 = vpop.f32.mrf.mxu0 }
  0xc7   :  { %v198_v9 = vadd.f32 %v197_v53, %v72_v7 }
  0xcc   :  { %v209_v52 = vpop.f32.mrf.mxu3 }
  0xcd   :  { %v210_v0 = vadd.f32 %v209_v52, %v92_v55 }
  0xce   :  { %v200_v57 = vpop.f32.mrf.mxu0 }
  0xcf   :  { %v201_v6 = vadd.f32 %v200_v57, %v77_v4  ;;  %v356_v57 = vld [vmem:[%s945_s5] sm:$0xff] }
  0xd4   :  { %v212_v56 = vpop.f32.mrf.mxu3 }
  0xd5   :  { %v213_v61 = vadd.f32 %v212_v56, %v97_v59  ;;  %v357_v59 = vld [vmem:[%s945_s5 + $0x8] sm:$0xff] }
  0xd6   :  { %v203_v1 = vpop.f32.mrf.mxu0 }
  0xd7   :  { %v204_v3 = vadd.f32 %v203_v1, %v82_v58  ;;  %v363_v1 = vld [vmem:[%s945_s5 + $0x38] sm:$0xff] }
  0xdc   :  { %v215_v60 = vpop.f32.mrf.mxu3 }
  0xdd   :  { %v216_v62 = vadd.f32 %v215_v60, %v102_v54  ;;  %v358_v60 = vld [vmem:[%s945_s5 + $0x10] sm:$0xff] }
  0xdf   :  { %581 = vtanh.f32 %v216_v62  ;;  %v360_v62 = vld [vmem:[%s945_s5 + $0x20] sm:$0xff] }
  0xe0   :  { %583 = vtanh.f32 %v213_v61  ;;  %v359_v61 = vld [vmem:[%s945_s5 + $0x18] sm:$0xff] }
  0xe1   :  { %585 = vtanh.f32 %v210_v0  ;;  %v362_v0 = vld [vmem:[%s945_s5 + $0x30] sm:$0xff] }
  0xe2   :  { %587 = vtanh.f32 %v207_v2 }
  0xe3   :  { %589 = vtanh.f32 %v204_v3 }
  0xe4   :  { %591 = vtanh.f32 %v201_v6 }
  0xe5   :  { %v582_v5 = vpop.eup %581  ;;  %593 = vtanh.f32 %v198_v9  ;;  %v405_v9 = vpop.permute.xlu2 %404 }
  0xe6   :  { %315 = vmatpush.msra.mxu1 %v582_v5  ;;  %v584_v8 = vpop.eup %583  ;;  %595 = vtanh.f32 %v195_v12 }
  0xe7   :  { %v586_v11 = vpop.eup %585 }
  0xe8   :  { %316 = vmatpush.msra.mxu1 %v584_v8  ;;  %v588_v13 = vpop.eup %587  ;;  %v410_v8 = vpop.permute.xlu1 %409 }
  0xe9   :  { %v590_v14 = vpop.eup %589 }
  0xea   :  { %317 = vmatpush.msra.mxu1 %v586_v11  ;;  %v592_v15 = vpop.eup %591  ;;  %v400_v11 = vpop.permute.xlu0 %399 }
  0xeb   :  { %v594_v16 = vpop.eup %593 }
  0xec   :  { %318 = vmatpush.msra.mxu1 %v588_v13  ;;  %v596_v18 = vpop.eup %595 }
  0xee   :  { %319 = vmatpush.msra.mxu1 %v590_v14 }
  0xf0   :  { %320 = vmatpush.msra.mxu1 %v592_v15  ;;  %v395_v12 = vpop.permute.xlu1 %394 }
  0xf2   :  { %321 = vmatpush.msra.mxu1 %v594_v16  ;;  %v390_v16 = vpop.permute.xlu2 %389 }
  0xf4   :  { %322 = vmatpush.msra.mxu1 %v596_v18 }
  0xf5   :  { %544 = vmatmul.msk.f32.vlgmr.msra.gmra.mxu1 %vm282_vm1, %v226_v17 }
  0xfd   :  { %545 = vmatmul.msk.f32.gmra.mxu1 %vm282_vm1, %v227_v19 }
 0x105   :  { %546 = vmatmul.msk.f32.gmra.mxu1 %vm282_vm1, %v228_v20  ;;  %v385_v20 = vpop.permute.xlu0 %384 }
 0x10d   :  { %547 = vmatmul.msk.f32.gmra.mxu1 %vm282_vm1, %v229_v21 }
 0x115   :  { %548 = vmatmul.msk.f32.gmra.mxu1 %vm282_vm1, %v230_v22 }
 0x11d   :  { %549 = vmatmul.msk.f32.gmra.mxu1 %vm282_vm1, %v231_v23  ;;  %v380_v23 = vpop.permute.xlu1 %379 }
 0x125   :  { %550 = vmatmul.msk.f32.gmra.mxu1 %vm282_vm1, %v232_v24 }
 0x12d   :  { %551 = vmatmul.msk.f32.gmra.mxu1 %vm282_vm1, %v233_v25 }
 0x172   :  { %v324_v26 = vpop.f32.mrf.mxu1 }
 0x173   :  { %v325_v52 = vadd.f32 %v324_v26, %v245_v50  ;;  %v375_v26 = vpop.permute.xlu2 %374 }
 0x17a   :  { %v327_v27 = vpop.f32.mrf.mxu1 }
 0x17b   :  { %v328_v49 = vadd.f32 %v327_v27, %v250_v47 }
 0x182   :  { %v330_v28 = vpop.f32.mrf.mxu1 }
 0x183   :  { %v331_v46 = vadd.f32 %v330_v28, %v255_v44 }
 0x18a   :  { %v333_v29 = vpop.f32.mrf.mxu1 }
 0x18b   :  { %v334_v43 = vadd.f32 %v333_v29, %v260_v40 }
 0x192   :  { %v336_v30 = vpop.f32.mrf.mxu1 }
 0x193   :  { %v337_v42 = vadd.f32 %v336_v30, %v265_v36 }
 0x19a   :  { %v339_v31 = vpop.f32.mrf.mxu1 }
 0x19b   :  { %v340_v41 = vadd.f32 %v339_v31, %v270_v35  ;;  %v490_v35 = vpop.permute.xlu0 %489 }
 0x1a2   :  { %v342_v34 = vpop.f32.mrf.mxu1 }
 0x1a3   :  { %v343_v38 = vadd.f32 %v342_v34, %v275_v33  ;;  %v485_v33 = vld [vmem:[%s946_s7] sm:$0xff] }
 0x1aa   :  { %v345_v37 = vpop.f32.mrf.mxu1 }
 0x1ab   :  { %v346_v39 = vadd.f32 %v345_v37, %v280_v32 }
 0x1ad   :  { %597 = vtanh.f32 %v346_v39 }
 0x1ae   :  { %599 = vtanh.f32 %v343_v38 }
 0x1af   :  { %601 = vtanh.f32 %v340_v41 }
 0x1b0   :  { %603 = vtanh.f32 %v337_v42 }
 0x1b1   :  { %605 = vtanh.f32 %v334_v43 }
 0x1b2   :  { %607 = vtanh.f32 %v331_v46 }
 0x1b3   :  { %v598_v45 = vpop.eup %597  ;;  %609 = vtanh.f32 %v328_v49 }
 0x1b4   :  { %444 = vmatpush.msra.mxu2 %v598_v45  ;;  %v600_v48 = vpop.eup %599  ;;  %611 = vtanh.f32 %v325_v52 }
 0x1b5   :  { %v602_v51 = vpop.eup %601 }
 0x1b6   :  { %445 = vmatpush.msra.mxu2 %v600_v48  ;;  %v604_v53 = vpop.eup %603 }
 0x1b7   :  { %v606_v54 = vpop.eup %605 }
 0x1b8   :  { %446 = vmatpush.msra.mxu2 %v602_v51  ;;  %v608_v55 = vpop.eup %607 }
 0x1b9   :  { %v610_v56 = vpop.eup %609 }
 0x1ba   :  { %447 = vmatpush.msra.mxu2 %v604_v53  ;;  %v612_v58 = vpop.eup %611 }
 0x1bc   :  { %448 = vmatpush.msra.mxu2 %v606_v54 }
 0x1be   :  { %449 = vmatpush.msra.mxu2 %v608_v55 }
 0x1c0   :  { %450 = vmatpush.msra.mxu2 %v610_v56 }
 0x1c2   :  { %451 = vmatpush.msra.mxu2 %v612_v58 }
 0x1c3   :  { %552 = vmatmul.msk.f32.vlgmr.msra.gmra.mxu2 %vm282_vm1, %v356_v57 }
 0x1cb   :  { %553 = vmatmul.msk.f32.gmra.mxu2 %vm282_vm1, %v357_v59 }
 0x1d3   :  { %554 = vmatmul.msk.f32.gmra.mxu2 %vm282_vm1, %v358_v60 }
 0x1db   :  { %555 = vmatmul.msk.f32.gmra.mxu2 %vm282_vm1, %v359_v61 }
 0x1e3   :  { %556 = vmatmul.msk.f32.gmra.mxu2 %vm282_vm1, %v360_v62 }
 0x1eb   :  { %557 = vmatmul.msk.f32.gmra.mxu2 %vm282_vm1, %v361_v63 }
 0x1f3   :  { %558 = vmatmul.msk.f32.gmra.mxu2 %vm282_vm1, %v362_v0 }
 0x1fb   :  { %559 = vmatmul.msk.f32.gmra.mxu2 %vm282_vm1, %v363_v1 }
 0x246   :  { %v453_v2 = vpop.f32.mrf.mxu2 }
 0x247   :  { %v454_v28 = vadd.f32 %v453_v2, %v375_v26 }
 0x24e   :  { %v456_v3 = vpop.f32.mrf.mxu2 }
 0x24f   :  { %v457_v25 = vadd.f32 %v456_v3, %v380_v23 }
 0x256   :  { %v459_v4 = vpop.f32.mrf.mxu2 }
 0x257   :  { %v460_v22 = vadd.f32 %v459_v4, %v385_v20 }
 0x25e   :  { %v462_v5 = vpop.f32.mrf.mxu2 }
 0x25f   :  { %v463_v19 = vadd.f32 %v462_v5, %v390_v16 }
 0x266   :  { %v465_v6 = vpop.f32.mrf.mxu2 }
 0x267   :  { %v466_v18 = vadd.f32 %v465_v6, %v395_v12 }
 0x26e   :  { %v468_v7 = vpop.f32.mrf.mxu2 }
 0x26f   :  { %v469_v17 = vadd.f32 %v468_v7, %v400_v11 }
 0x276   :  { %v471_v10 = vpop.f32.mrf.mxu2 }
 0x277   :  { %v472_v14 = vadd.f32 %v471_v10, %v405_v9 }
 0x27e   :  { %v474_v13 = vpop.f32.mrf.mxu2 }
 0x27f   :  { %v475_v15 = vadd.f32 %v474_v13, %v410_v8 }
 0x281   :  { %613 = vtanh.f32 %v475_v15 }
 0x282   :  { %615 = vtanh.f32 %v472_v14 }
 0x283   :  { %617 = vtanh.f32 %v469_v17 }
 0x284   :  { %619 = vtanh.f32 %v466_v18 }
 0x285   :  { %621 = vtanh.f32 %v463_v19 }
 0x286   :  { %623 = vtanh.f32 %v460_v22 }
 0x287   :  { %v614_v21 = vpop.eup %613  ;;  %625 = vtanh.f32 %v457_v25 }
 0x288   :  { %503 = vmatpush.msrb.mxu1 %v614_v21  ;;  %v616_v24 = vpop.eup %615  ;;  %627 = vtanh.f32 %v454_v28 }
 0x289   :  { %v618_v27 = vpop.eup %617 }
 0x28a   :  { %504 = vmatpush.msrb.mxu1 %v616_v24  ;;  %v620_v29 = vpop.eup %619 }
 0x28b   :  { %v622_v30 = vpop.eup %621 }
 0x28c   :  { %505 = vmatpush.msrb.mxu1 %v618_v27  ;;  %v624_v31 = vpop.eup %623 }
 0x28d   :  { %v626_v32 = vpop.eup %625 }
 0x28e   :  { %506 = vmatpush.msrb.mxu1 %v620_v29  ;;  %v628_v34 = vpop.eup %627 }
 0x290   :  { %507 = vmatpush.msrb.mxu1 %v622_v30 }
 0x292   :  { %508 = vmatpush.msrb.mxu1 %v624_v31 }
 0x294   :  { %509 = vmatpush.msrb.mxu1 %v626_v32 }
 0x296   :  { %510 = vmatpush.msrb.mxu1 %v628_v34 }
 0x297   :  { %560 = vmatmul.msk.f32.vlgmr.msrb.gmra.mxu1 %vm282_vm1, %v485_v33 }
 0x314   :  { %v512_v36 = vpop.f32.mrf.mxu1 }
 0x315   :  { %v513_v37 = vadd.f32 %v512_v36, %v490_v35 }
 0x317   :  { %515 = vst [vmem:[%s947_s9] sm:$0xff] %v513_v37 }

</bundles_post_ra>
